<compile_context>
chip_gen: v7x
topology: tpu7x:2x2x1
jax: 0.10.0
libtpu: 0.0.40
codegen_flags: <defaults>
</compile_context>

<pallas_src>
import functools

import jax
import jax.numpy as jnp
from jax.experimental import pallas as pl
from jax.experimental.pallas import tpu as pltpu

IN_F = 4     # l1 input features
HID_F = 6    # l1 output / l2 input features
OUT_F = 3    # l2 output features

SUBLANES = 8
LANES = 128
TILE = SUBLANES * LANES   # 1024 batch rows == one fully packed f32 vreg / feature


def _round_up(n, m):
    return ((n + m - 1) // m) * m


def mlp_kernel(w1_ref, b1_ref, w2_ref, b2_ref, x_ref, o_ref):
    """One batch tile, batch packed on (sublane, lane).

    x_ref : (IN_F, 8, TL)   VMEM  -- one fully packed (8, TL) slab per feature
    o_ref : (OUT_F, 8, TL)  VMEM
    w1_ref: (HID_F, IN_F)   SMEM  (torch layout: out x in)
    b1_ref: (HID_F,)        SMEM
    w2_ref: (OUT_F, HID_F)  SMEM
    b2_ref: (OUT_F,)        SMEM
    """
    # Load the IN_F feature slabs once; each is a dense (8, TL) f32 tile.
    x_slabs = [x_ref[k] for k in range(IN_F)]

    # Layer 1 + ReLU: unrolled scalar-broadcast FMAs on the VPU.
    h_slabs = []
    for j in range(HID_F):
        acc = w1_ref[j, 0] * x_slabs[0]
        for k in range(1, IN_F):
            acc = acc + w1_ref[j, k] * x_slabs[k]
        h_slabs.append(jnp.maximum(acc + b1_ref[j], 0.0))

    # Layer 2.
    z_slabs = []
    for m in range(OUT_F):
        acc = w2_ref[m, 0] * h_slabs[0]
        for j in range(1, HID_F):
            acc = acc + w2_ref[m, j] * h_slabs[j]
        z_slabs.append(acc + b2_ref[m])

    # Numerically-stable softmax across the OUT_F feature slabs (per batch elem).
    zmax = z_slabs[0]
    for m in range(1, OUT_F):
        zmax = jnp.maximum(zmax, z_slabs[m])
    e_slabs = [jnp.exp(z - zmax) for z in z_slabs]
    denom = e_slabs[0]
    for m in range(1, OUT_F):
        denom = denom + e_slabs[m]
    inv = 1.0 / denom   # exact: keeps sum(probs) == 1 to f32 rounding
    for m in range(OUT_F):
        o_ref[m] = e_slabs[m] * inv


@functools.partial(jax.jit, static_argnames=("block_b",))
def sample_module_forward(x, w1, b1, w2, b2, *, block_b=131072):
    """x: (B, 4) float32 -> (B, 3) float32 softmax probabilities."""
    B = x.shape[0]

    # Batch tile (rows). Multiple of 1024 so each feature slab is (8, k*128).
    bp_min = _round_up(max(B, 1), TILE)
    tb = min(_round_up(block_b, TILE), bp_min)
    # v7x megacore: keep >= 2 grid steps when the batch spans multiple minimal
    # tiles so the "parallel" grid axis can shard across both TensorCores.
    if bp_min > TILE:
        tb = min(tb, _round_up((bp_min + 1) // 2, TILE))
    bp = _round_up(bp_min, tb)
    tl = tb // SUBLANES          # lane extent of one block (multiple of 128)

    # Feature-major, (sublane, lane)-packed layout: (B,4) -> (4, 8, bp//8).
    # Under jit the transpose+pad+reshape fuse into a single copy of x.
    # TODO(synk): fusing the feature de-interleave into the kernel (stride-4
    # XLU lane ops on a flat lane-dense load) would remove this copy entirely.
    x_t = jnp.pad(x.T.astype(jnp.float32), ((0, 0), (0, bp - B)))
    x_3d = x_t.reshape(IN_F, SUBLANES, bp // SUBLANES)

    smem = pl.BlockSpec(memory_space=pltpu.MemorySpace.SMEM)
    out_3d = pl.pallas_call(
        mlp_kernel,
        out_shape=jax.ShapeDtypeStruct(
            (OUT_F, SUBLANES, bp // SUBLANES), jnp.float32),
        grid=(bp // tb,),
        in_specs=[smem, smem, smem, smem,
                  pl.BlockSpec((IN_F, SUBLANES, tl), lambda i: (0, 0, i))],
        out_specs=pl.BlockSpec((OUT_F, SUBLANES, tl), lambda i: (0, 0, i)),
        compiler_params=pltpu.CompilerParams(
            dimension_semantics=("parallel",)),
    )(w1.astype(jnp.float32), b1.astype(jnp.float32),
      w2.astype(jnp.float32), b2.astype(jnp.float32), x_3d)

    out_t = out_3d.reshape(OUT_F, bp)
    return out_t[:, :B].T


def reference_forward(x, w1, b1, w2, b2):
    h = jnp.maximum(x @ w1.T + b1, 0.0)
    z = h @ w2.T + b2
    return jax.nn.softmax(z, axis=-1)


def init_params():
    """Deterministic synthetic parameters in torch nn.Linear layout."""
    k1, k2, k3, k4 = jax.random.split(jax.random.PRNGKey(0), 4)
    w1 = jax.random.uniform(k1, (HID_F, IN_F), jnp.float32, -0.5, 0.5)
    b1 = jax.random.uniform(k2, (HID_F,), jnp.float32, -0.5, 0.5)
    w2 = jax.random.uniform(k3, (OUT_F, HID_F), jnp.float32, -0.5, 0.5)
    b2 = jax.random.uniform(k4, (OUT_F,), jnp.float32, -0.5, 0.5)
    return w1, b1, w2, b2


if __name__ == "__main__":
    w1, b1, w2, b2 = init_params()

    # Small canonical shape implied by the module: batch=2, in_features=4.
    x_small = jax.random.normal(jax.random.PRNGKey(0), (2, IN_F), jnp.float32)
    out = jax.block_until_ready(sample_module_forward(x_small, w1, b1, w2, b2))
    ref = reference_forward(x_small, w1, b1, w2, b2)
    assert out.shape == (2, OUT_F)
    assert jnp.allclose(out, ref, atol=1e-4, rtol=1e-4)
    assert jnp.allclose(jnp.sum(out, axis=-1), 1.0, atol=1e-4)

    # Exercise a multi-tile grid + ragged batch tail (2500 rows, 1024-row tiles).
    x_big = jax.random.normal(jax.random.PRNGKey(1), (2500, IN_F), jnp.float32)
    out_big = jax.block_until_ready(
        sample_module_forward(x_big, w1, b1, w2, b2, block_b=1024))
    ref_big = reference_forward(x_big, w1, b1, w2, b2)
    assert out_big.shape == (2500, OUT_F)
    assert jnp.allclose(out_big, ref_big, atol=1e-4, rtol=1e-4)
    assert jnp.allclose(jnp.sum(out_big, axis=-1), 1.0, atol=1e-4)

    print("KERNEL_OK")
</pallas_src>

<mosaic_0001>
module attributes {stable_mosaic.version = 11 : i64} {
  func.func @mlp_kernel(%arg0: i32, %arg1: memref<6x4xf32, #tpu.memory_space<smem>>, %arg2: memref<6xf32, #tpu.memory_space<smem>>, %arg3: memref<3x6xf32, #tpu.memory_space<smem>>, %arg4: memref<3xf32, #tpu.memory_space<smem>>, %arg5: memref<4x8x128xf32, #tpu.memory_space<vmem>>, %arg6: memref<3x8x128xf32, #tpu.memory_space<vmem>>) attributes {dimension_semantics = [#tpu.dimension_semantics<parallel>], iteration_bounds = array<i64: 1>, scalar_prefetch = 0 : i64, scratch_operands = 0 : i64, tpu.core_type = #tpu.core_type<tc>, window_params = [{transform_indices = @transform_0, window_bounds = array<i64: 6, 4>}, {transform_indices = @transform_1, window_bounds = array<i64: 6>}, {transform_indices = @transform_2, window_bounds = array<i64: 3, 6>}, {transform_indices = @transform_3, window_bounds = array<i64: 3>}, {transform_indices = @transform_4, window_bounds = array<i64: 4, 8, 128>}, {transform_indices = @transform_5, window_bounds = array<i64: 3, 8, 128>}]} {
    %c0 = arith.constant 0 : index
    %c0_0 = arith.constant 0 : index
    %c0_1 = arith.constant 0 : index
    %0 = vector.load %arg5[%c0, %c0_0, %c0_1] : memref<4x8x128xf32, #tpu.memory_space<vmem>>, vector<1x8x128xf32>
    %1 = vector.shape_cast %0 : vector<1x8x128xf32> to vector<8x128xf32>
    %c1 = arith.constant 1 : index
    %c0_2 = arith.constant 0 : index
    %c0_3 = arith.constant 0 : index
    %2 = vector.load %arg5[%c1, %c0_2, %c0_3] : memref<4x8x128xf32, #tpu.memory_space<vmem>>, vector<1x8x128xf32>
    %3 = vector.shape_cast %2 : vector<1x8x128xf32> to vector<8x128xf32>
    %c2 = arith.constant 2 : index
    %c0_4 = arith.constant 0 : index
    %c0_5 = arith.constant 0 : index
    %4 = vector.load %arg5[%c2, %c0_4, %c0_5] : memref<4x8x128xf32, #tpu.memory_space<vmem>>, vector<1x8x128xf32>
    %5 = vector.shape_cast %4 : vector<1x8x128xf32> to vector<8x128xf32>
    %c3 = arith.constant 3 : index
    %c0_6 = arith.constant 0 : index
    %c0_7 = arith.constant 0 : index
    %6 = vector.load %arg5[%c3, %c0_6, %c0_7] : memref<4x8x128xf32, #tpu.memory_space<vmem>>, vector<1x8x128xf32>
    %7 = vector.shape_cast %6 : vector<1x8x128xf32> to vector<8x128xf32>
    %c0_8 = arith.constant 0 : index
    %c0_9 = arith.constant 0 : index
    %8 = memref.load %arg1[%c0_8, %c0_9] : memref<6x4xf32, #tpu.memory_space<smem>>
    %9 = vector.broadcast %8 : f32 to vector<8x128xf32>
    %10 = arith.mulf %9, %1 : vector<8x128xf32>
    %c0_10 = arith.constant 0 : index
    %c1_11 = arith.constant 1 : index
    %11 = memref.load %arg1[%c0_10, %c1_11] : memref<6x4xf32, #tpu.memory_space<smem>>
    %12 = vector.broadcast %11 : f32 to vector<8x128xf32>
    %13 = arith.mulf %12, %3 : vector<8x128xf32>
    %14 = arith.addf %10, %13 : vector<8x128xf32>
    %c0_12 = arith.constant 0 : index
    %c2_13 = arith.constant 2 : index
    %15 = memref.load %arg1[%c0_12, %c2_13] : memref<6x4xf32, #tpu.memory_space<smem>>
    %16 = vector.broadcast %15 : f32 to vector<8x128xf32>
    %17 = arith.mulf %16, %5 : vector<8x128xf32>
    %18 = arith.addf %14, %17 : vector<8x128xf32>
    %c0_14 = arith.constant 0 : index
    %c3_15 = arith.constant 3 : index
    %19 = memref.load %arg1[%c0_14, %c3_15] : memref<6x4xf32, #tpu.memory_space<smem>>
    %20 = vector.broadcast %19 : f32 to vector<8x128xf32>
    %21 = arith.mulf %20, %7 : vector<8x128xf32>
    %22 = arith.addf %18, %21 : vector<8x128xf32>
    %c0_16 = arith.constant 0 : index
    %23 = memref.load %arg2[%c0_16] : memref<6xf32, #tpu.memory_space<smem>>
    %24 = vector.broadcast %23 : f32 to vector<8x128xf32>
    %25 = arith.addf %22, %24 : vector<8x128xf32>
    %cst = arith.constant 0.000000e+00 : f32
    %26 = vector.broadcast %cst : f32 to vector<8x128xf32>
    %27 = arith.maximumf %25, %26 : vector<8x128xf32>
    %c1_17 = arith.constant 1 : index
    %c0_18 = arith.constant 0 : index
    %28 = memref.load %arg1[%c1_17, %c0_18] : memref<6x4xf32, #tpu.memory_space<smem>>
    %29 = vector.broadcast %28 : f32 to vector<8x128xf32>
    %30 = arith.mulf %29, %1 : vector<8x128xf32>
    %c1_19 = arith.constant 1 : index
    %c1_20 = arith.constant 1 : index
    %31 = memref.load %arg1[%c1_19, %c1_20] : memref<6x4xf32, #tpu.memory_space<smem>>
    %32 = vector.broadcast %31 : f32 to vector<8x128xf32>
    %33 = arith.mulf %32, %3 : vector<8x128xf32>
    %34 = arith.addf %30, %33 : vector<8x128xf32>
    %c1_21 = arith.constant 1 : index
    %c2_22 = arith.constant 2 : index
    %35 = memref.load %arg1[%c1_21, %c2_22] : memref<6x4xf32, #tpu.memory_space<smem>>
    %36 = vector.broadcast %35 : f32 to vector<8x128xf32>
    %37 = arith.mulf %36, %5 : vector<8x128xf32>
    %38 = arith.addf %34, %37 : vector<8x128xf32>
    %c1_23 = arith.constant 1 : index
    %c3_24 = arith.constant 3 : index
    %39 = memref.load %arg1[%c1_23, %c3_24] : memref<6x4xf32, #tpu.memory_space<smem>>
    %40 = vector.broadcast %39 : f32 to vector<8x128xf32>
    %41 = arith.mulf %40, %7 : vector<8x128xf32>
    %42 = arith.addf %38, %41 : vector<8x128xf32>
    %c1_25 = arith.constant 1 : index
    %43 = memref.load %arg2[%c1_25] : memref<6xf32, #tpu.memory_space<smem>>
    %44 = vector.broadcast %43 : f32 to vector<8x128xf32>
    %45 = arith.addf %42, %44 : vector<8x128xf32>
    %cst_26 = arith.constant 0.000000e+00 : f32
    %46 = vector.broadcast %cst_26 : f32 to vector<8x128xf32>
    %47 = arith.maximumf %45, %46 : vector<8x128xf32>
    %c2_27 = arith.constant 2 : index
    %c0_28 = arith.constant 0 : index
    %48 = memref.load %arg1[%c2_27, %c0_28] : memref<6x4xf32, #tpu.memory_space<smem>>
    %49 = vector.broadcast %48 : f32 to vector<8x128xf32>
    %50 = arith.mulf %49, %1 : vector<8x128xf32>
    %c2_29 = arith.constant 2 : index
    %c1_30 = arith.constant 1 : index
    %51 = memref.load %arg1[%c2_29, %c1_30] : memref<6x4xf32, #tpu.memory_space<smem>>
    %52 = vector.broadcast %51 : f32 to vector<8x128xf32>
    %53 = arith.mulf %52, %3 : vector<8x128xf32>
    %54 = arith.addf %50, %53 : vector<8x128xf32>
    %c2_31 = arith.constant 2 : index
    %c2_32 = arith.constant 2 : index
    %55 = memref.load %arg1[%c2_31, %c2_32] : memref<6x4xf32, #tpu.memory_space<smem>>
    %56 = vector.broadcast %55 : f32 to vector<8x128xf32>
    %57 = arith.mulf %56, %5 : vector<8x128xf32>
    %58 = arith.addf %54, %57 : vector<8x128xf32>
    %c2_33 = arith.constant 2 : index
    %c3_34 = arith.constant 3 : index
    %59 = memref.load %arg1[%c2_33, %c3_34] : memref<6x4xf32, #tpu.memory_space<smem>>
    %60 = vector.broadcast %59 : f32 to vector<8x128xf32>
    %61 = arith.mulf %60, %7 : vector<8x128xf32>
    %62 = arith.addf %58, %61 : vector<8x128xf32>
    %c2_35 = arith.constant 2 : index
    %63 = memref.load %arg2[%c2_35] : memref<6xf32, #tpu.memory_space<smem>>
    %64 = vector.broadcast %63 : f32 to vector<8x128xf32>
    %65 = arith.addf %62, %64 : vector<8x128xf32>
    %cst_36 = arith.constant 0.000000e+00 : f32
    %66 = vector.broadcast %cst_36 : f32 to vector<8x128xf32>
    %67 = arith.maximumf %65, %66 : vector<8x128xf32>
    %c3_37 = arith.constant 3 : index
    %c0_38 = arith.constant 0 : index
    %68 = memref.load %arg1[%c3_37, %c0_38] : memref<6x4xf32, #tpu.memory_space<smem>>
    %69 = vector.broadcast %68 : f32 to vector<8x128xf32>
    %70 = arith.mulf %69, %1 : vector<8x128xf32>
    %c3_39 = arith.constant 3 : index
    %c1_40 = arith.constant 1 : index
    %71 = memref.load %arg1[%c3_39, %c1_40] : memref<6x4xf32, #tpu.memory_space<smem>>
    %72 = vector.broadcast %71 : f32 to vector<8x128xf32>
    %73 = arith.mulf %72, %3 : vector<8x128xf32>
    %74 = arith.addf %70, %73 : vector<8x128xf32>
    %c3_41 = arith.constant 3 : index
    %c2_42 = arith.constant 2 : index
    %75 = memref.load %arg1[%c3_41, %c2_42] : memref<6x4xf32, #tpu.memory_space<smem>>
    %76 = vector.broadcast %75 : f32 to vector<8x128xf32>
    %77 = arith.mulf %76, %5 : vector<8x128xf32>
    %78 = arith.addf %74, %77 : vector<8x128xf32>
    %c3_43 = arith.constant 3 : index
    %c3_44 = arith.constant 3 : index
    %79 = memref.load %arg1[%c3_43, %c3_44] : memref<6x4xf32, #tpu.memory_space<smem>>
    %80 = vector.broadcast %79 : f32 to vector<8x128xf32>
    %81 = arith.mulf %80, %7 : vector<8x128xf32>
    %82 = arith.addf %78, %81 : vector<8x128xf32>
    %c3_45 = arith.constant 3 : index
    %83 = memref.load %arg2[%c3_45] : memref<6xf32, #tpu.memory_space<smem>>
    %84 = vector.broadcast %83 : f32 to vector<8x128xf32>
    %85 = arith.addf %82, %84 : vector<8x128xf32>
    %cst_46 = arith.constant 0.000000e+00 : f32
    %86 = vector.broadcast %cst_46 : f32 to vector<8x128xf32>
    %87 = arith.maximumf %85, %86 : vector<8x128xf32>
    %c4 = arith.constant 4 : index
    %c0_47 = arith.constant 0 : index
    %88 = memref.load %arg1[%c4, %c0_47] : memref<6x4xf32, #tpu.memory_space<smem>>
    %89 = vector.broadcast %88 : f32 to vector<8x128xf32>
    %90 = arith.mulf %89, %1 : vector<8x128xf32>
    %c4_48 = arith.constant 4 : index
    %c1_49 = arith.constant 1 : index
    %91 = memref.load %arg1[%c4_48, %c1_49] : memref<6x4xf32, #tpu.memory_space<smem>>
    %92 = vector.broadcast %91 : f32 to vector<8x128xf32>
    %93 = arith.mulf %92, %3 : vector<8x128xf32>
    %94 = arith.addf %90, %93 : vector<8x128xf32>
    %c4_50 = arith.constant 4 : index
    %c2_51 = arith.constant 2 : index
    %95 = memref.load %arg1[%c4_50, %c2_51] : memref<6x4xf32, #tpu.memory_space<smem>>
    %96 = vector.broadcast %95 : f32 to vector<8x128xf32>
    %97 = arith.mulf %96, %5 : vector<8x128xf32>
    %98 = arith.addf %94, %97 : vector<8x128xf32>
    %c4_52 = arith.constant 4 : index
    %c3_53 = arith.constant 3 : index
    %99 = memref.load %arg1[%c4_52, %c3_53] : memref<6x4xf32, #tpu.memory_space<smem>>
    %100 = vector.broadcast %99 : f32 to vector<8x128xf32>
    %101 = arith.mulf %100, %7 : vector<8x128xf32>
    %102 = arith.addf %98, %101 : vector<8x128xf32>
    %c4_54 = arith.constant 4 : index
    %103 = memref.load %arg2[%c4_54] : memref<6xf32, #tpu.memory_space<smem>>
    %104 = vector.broadcast %103 : f32 to vector<8x128xf32>
    %105 = arith.addf %102, %104 : vector<8x128xf32>
    %cst_55 = arith.constant 0.000000e+00 : f32
    %106 = vector.broadcast %cst_55 : f32 to vector<8x128xf32>
    %107 = arith.maximumf %105, %106 : vector<8x128xf32>
    %c5 = arith.constant 5 : index
    %c0_56 = arith.constant 0 : index
    %108 = memref.load %arg1[%c5, %c0_56] : memref<6x4xf32, #tpu.memory_space<smem>>
    %109 = vector.broadcast %108 : f32 to vector<8x128xf32>
    %110 = arith.mulf %109, %1 : vector<8x128xf32>
    %c5_57 = arith.constant 5 : index
    %c1_58 = arith.constant 1 : index
    %111 = memref.load %arg1[%c5_57, %c1_58] : memref<6x4xf32, #tpu.memory_space<smem>>
    %112 = vector.broadcast %111 : f32 to vector<8x128xf32>
    %113 = arith.mulf %112, %3 : vector<8x128xf32>
    %114 = arith.addf %110, %113 : vector<8x128xf32>
    %c5_59 = arith.constant 5 : index
    %c2_60 = arith.constant 2 : index
    %115 = memref.load %arg1[%c5_59, %c2_60] : memref<6x4xf32, #tpu.memory_space<smem>>
    %116 = vector.broadcast %115 : f32 to vector<8x128xf32>
    %117 = arith.mulf %116, %5 : vector<8x128xf32>
    %118 = arith.addf %114, %117 : vector<8x128xf32>
    %c5_61 = arith.constant 5 : index
    %c3_62 = arith.constant 3 : index
    %119 = memref.load %arg1[%c5_61, %c3_62] : memref<6x4xf32, #tpu.memory_space<smem>>
    %120 = vector.broadcast %119 : f32 to vector<8x128xf32>
    %121 = arith.mulf %120, %7 : vector<8x128xf32>
    %122 = arith.addf %118, %121 : vector<8x128xf32>
    %c5_63 = arith.constant 5 : index
    %123 = memref.load %arg2[%c5_63] : memref<6xf32, #tpu.memory_space<smem>>
    %124 = vector.broadcast %123 : f32 to vector<8x128xf32>
    %125 = arith.addf %122, %124 : vector<8x128xf32>
    %cst_64 = arith.constant 0.000000e+00 : f32
    %126 = vector.broadcast %cst_64 : f32 to vector<8x128xf32>
    %127 = arith.maximumf %125, %126 : vector<8x128xf32>
    %c0_65 = arith.constant 0 : index
    %c0_66 = arith.constant 0 : index
    %128 = memref.load %arg3[%c0_65, %c0_66] : memref<3x6xf32, #tpu.memory_space<smem>>
    %129 = vector.broadcast %128 : f32 to vector<8x128xf32>
    %130 = arith.mulf %129, %27 : vector<8x128xf32>
    %c0_67 = arith.constant 0 : index
    %c1_68 = arith.constant 1 : index
    %131 = memref.load %arg3[%c0_67, %c1_68] : memref<3x6xf32, #tpu.memory_space<smem>>
    %132 = vector.broadcast %131 : f32 to vector<8x128xf32>
    %133 = arith.mulf %132, %47 : vector<8x128xf32>
    %134 = arith.addf %130, %133 : vector<8x128xf32>
    %c0_69 = arith.constant 0 : index
    %c2_70 = arith.constant 2 : index
    %135 = memref.load %arg3[%c0_69, %c2_70] : memref<3x6xf32, #tpu.memory_space<smem>>
    %136 = vector.broadcast %135 : f32 to vector<8x128xf32>
    %137 = arith.mulf %136, %67 : vector<8x128xf32>
    %138 = arith.addf %134, %137 : vector<8x128xf32>
    %c0_71 = arith.constant 0 : index
    %c3_72 = arith.constant 3 : index
    %139 = memref.load %arg3[%c0_71, %c3_72] : memref<3x6xf32, #tpu.memory_space<smem>>
    %140 = vector.broadcast %139 : f32 to vector<8x128xf32>
    %141 = arith.mulf %140, %87 : vector<8x128xf32>
    %142 = arith.addf %138, %141 : vector<8x128xf32>
    %c0_73 = arith.constant 0 : index
    %c4_74 = arith.constant 4 : index
    %143 = memref.load %arg3[%c0_73, %c4_74] : memref<3x6xf32, #tpu.memory_space<smem>>
    %144 = vector.broadcast %143 : f32 to vector<8x128xf32>
    %145 = arith.mulf %144, %107 : vector<8x128xf32>
    %146 = arith.addf %142, %145 : vector<8x128xf32>
    %c0_75 = arith.constant 0 : index
    %c5_76 = arith.constant 5 : index
    %147 = memref.load %arg3[%c0_75, %c5_76] : memref<3x6xf32, #tpu.memory_space<smem>>
    %148 = vector.broadcast %147 : f32 to vector<8x128xf32>
    %149 = arith.mulf %148, %127 : vector<8x128xf32>
    %150 = arith.addf %146, %149 : vector<8x128xf32>
    %c0_77 = arith.constant 0 : index
    %151 = memref.load %arg4[%c0_77] : memref<3xf32, #tpu.memory_space<smem>>
    %152 = vector.broadcast %151 : f32 to vector<8x128xf32>
    %153 = arith.addf %150, %152 : vector<8x128xf32>
    %c1_78 = arith.constant 1 : index
    %c0_79 = arith.constant 0 : index
    %154 = memref.load %arg3[%c1_78, %c0_79] : memref<3x6xf32, #tpu.memory_space<smem>>
    %155 = vector.broadcast %154 : f32 to vector<8x128xf32>
    %156 = arith.mulf %155, %27 : vector<8x128xf32>
    %c1_80 = arith.constant 1 : index
    %c1_81 = arith.constant 1 : index
    %157 = memref.load %arg3[%c1_80, %c1_81] : memref<3x6xf32, #tpu.memory_space<smem>>
    %158 = vector.broadcast %157 : f32 to vector<8x128xf32>
    %159 = arith.mulf %158, %47 : vector<8x128xf32>
    %160 = arith.addf %156, %159 : vector<8x128xf32>
    %c1_82 = arith.constant 1 : index
    %c2_83 = arith.constant 2 : index
    %161 = memref.load %arg3[%c1_82, %c2_83] : memref<3x6xf32, #tpu.memory_space<smem>>
    %162 = vector.broadcast %161 : f32 to vector<8x128xf32>
    %163 = arith.mulf %162, %67 : vector<8x128xf32>
    %164 = arith.addf %160, %163 : vector<8x128xf32>
    %c1_84 = arith.constant 1 : index
    %c3_85 = arith.constant 3 : index
    %165 = memref.load %arg3[%c1_84, %c3_85] : memref<3x6xf32, #tpu.memory_space<smem>>
    %166 = vector.broadcast %165 : f32 to vector<8x128xf32>
    %167 = arith.mulf %166, %87 : vector<8x128xf32>
    %168 = arith.addf %164, %167 : vector<8x128xf32>
    %c1_86 = arith.constant 1 : index
    %c4_87 = arith.constant 4 : index
    %169 = memref.load %arg3[%c1_86, %c4_87] : memref<3x6xf32, #tpu.memory_space<smem>>
    %170 = vector.broadcast %169 : f32 to vector<8x128xf32>
    %171 = arith.mulf %170, %107 : vector<8x128xf32>
    %172 = arith.addf %168, %171 : vector<8x128xf32>
    %c1_88 = arith.constant 1 : index
    %c5_89 = arith.constant 5 : index
    %173 = memref.load %arg3[%c1_88, %c5_89] : memref<3x6xf32, #tpu.memory_space<smem>>
    %174 = vector.broadcast %173 : f32 to vector<8x128xf32>
    %175 = arith.mulf %174, %127 : vector<8x128xf32>
    %176 = arith.addf %172, %175 : vector<8x128xf32>
    %c1_90 = arith.constant 1 : index
    %177 = memref.load %arg4[%c1_90] : memref<3xf32, #tpu.memory_space<smem>>
    %178 = vector.broadcast %177 : f32 to vector<8x128xf32>
    %179 = arith.addf %176, %178 : vector<8x128xf32>
    %c2_91 = arith.constant 2 : index
    %c0_92 = arith.constant 0 : index
    %180 = memref.load %arg3[%c2_91, %c0_92] : memref<3x6xf32, #tpu.memory_space<smem>>
    %181 = vector.broadcast %180 : f32 to vector<8x128xf32>
    %182 = arith.mulf %181, %27 : vector<8x128xf32>
    %c2_93 = arith.constant 2 : index
    %c1_94 = arith.constant 1 : index
    %183 = memref.load %arg3[%c2_93, %c1_94] : memref<3x6xf32, #tpu.memory_space<smem>>
    %184 = vector.broadcast %183 : f32 to vector<8x128xf32>
    %185 = arith.mulf %184, %47 : vector<8x128xf32>
    %186 = arith.addf %182, %185 : vector<8x128xf32>
    %c2_95 = arith.constant 2 : index
    %c2_96 = arith.constant 2 : index
    %187 = memref.load %arg3[%c2_95, %c2_96] : memref<3x6xf32, #tpu.memory_space<smem>>
    %188 = vector.broadcast %187 : f32 to vector<8x128xf32>
    %189 = arith.mulf %188, %67 : vector<8x128xf32>
    %190 = arith.addf %186, %189 : vector<8x128xf32>
    %c2_97 = arith.constant 2 : index
    %c3_98 = arith.constant 3 : index
    %191 = memref.load %arg3[%c2_97, %c3_98] : memref<3x6xf32, #tpu.memory_space<smem>>
    %192 = vector.broadcast %191 : f32 to vector<8x128xf32>
    %193 = arith.mulf %192, %87 : vector<8x128xf32>
    %194 = arith.addf %190, %193 : vector<8x128xf32>
    %c2_99 = arith.constant 2 : index
    %c4_100 = arith.constant 4 : index
    %195 = memref.load %arg3[%c2_99, %c4_100] : memref<3x6xf32, #tpu.memory_space<smem>>
    %196 = vector.broadcast %195 : f32 to vector<8x128xf32>
    %197 = arith.mulf %196, %107 : vector<8x128xf32>
    %198 = arith.addf %194, %197 : vector<8x128xf32>
    %c2_101 = arith.constant 2 : index
    %c5_102 = arith.constant 5 : index
    %199 = memref.load %arg3[%c2_101, %c5_102] : memref<3x6xf32, #tpu.memory_space<smem>>
    %200 = vector.broadcast %199 : f32 to vector<8x128xf32>
    %201 = arith.mulf %200, %127 : vector<8x128xf32>
    %202 = arith.addf %198, %201 : vector<8x128xf32>
    %c2_103 = arith.constant 2 : index
    %203 = memref.load %arg4[%c2_103] : memref<3xf32, #tpu.memory_space<smem>>
    %204 = vector.broadcast %203 : f32 to vector<8x128xf32>
    %205 = arith.addf %202, %204 : vector<8x128xf32>
    %206 = arith.maximumf %153, %179 : vector<8x128xf32>
    %207 = arith.maximumf %206, %205 : vector<8x128xf32>
    %208 = arith.subf %153, %207 : vector<8x128xf32>
    %209 = math.exp %208 : vector<8x128xf32>
    %210 = arith.subf %179, %207 : vector<8x128xf32>
    %211 = math.exp %210 : vector<8x128xf32>
    %212 = arith.subf %205, %207 : vector<8x128xf32>
    %213 = math.exp %212 : vector<8x128xf32>
    %214 = arith.addf %209, %211 : vector<8x128xf32>
    %215 = arith.addf %214, %213 : vector<8x128xf32>
    %cst_104 = arith.constant 1.000000e+00 : f32
    %216 = vector.broadcast %cst_104 : f32 to vector<8x128xf32>
    %217 = arith.divf %216, %215 : vector<8x128xf32>
    %218 = arith.mulf %209, %217 : vector<8x128xf32>
    %c0_105 = arith.constant 0 : index
    %c0_106 = arith.constant 0 : index
    %c0_107 = arith.constant 0 : index
    %219 = vector.load %arg6[%c0_105, %c0_106, %c0_107] : memref<3x8x128xf32, #tpu.memory_space<vmem>>, vector<1x8x128xf32>
    %220 = vector.shape_cast %219 : vector<1x8x128xf32> to vector<8x128xf32>
    %221 = vector.shape_cast %218 : vector<8x128xf32> to vector<1x8x128xf32>
    tpu.vector_store %arg6[%c0_105, %c0_106, %c0_107], %221 {strides = array<i32>} : memref<3x8x128xf32, #tpu.memory_space<vmem>>, vector<1x8x128xf32>,
    %222 = arith.mulf %211, %217 : vector<8x128xf32>
    %c1_108 = arith.constant 1 : index
    %c0_109 = arith.constant 0 : index
    %c0_110 = arith.constant 0 : index
    %223 = vector.load %arg6[%c1_108, %c0_109, %c0_110] : memref<3x8x128xf32, #tpu.memory_space<vmem>>, vector<1x8x128xf32>
    %224 = vector.shape_cast %223 : vector<1x8x128xf32> to vector<8x128xf32>
    %225 = vector.shape_cast %222 : vector<8x128xf32> to vector<1x8x128xf32>
    tpu.vector_store %arg6[%c1_108, %c0_109, %c0_110], %225 {strides = array<i32>} : memref<3x8x128xf32, #tpu.memory_space<vmem>>, vector<1x8x128xf32>,
    %226 = arith.mulf %213, %217 : vector<8x128xf32>
    %c2_111 = arith.constant 2 : index
    %c0_112 = arith.constant 0 : index
    %c0_113 = arith.constant 0 : index
    %227 = vector.load %arg6[%c2_111, %c0_112, %c0_113] : memref<3x8x128xf32, #tpu.memory_space<vmem>>, vector<1x8x128xf32>
    %228 = vector.shape_cast %227 : vector<1x8x128xf32> to vector<8x128xf32>
    %229 = vector.shape_cast %226 : vector<8x128xf32> to vector<1x8x128xf32>
    tpu.vector_store %arg6[%c2_111, %c0_112, %c0_113], %229 {strides = array<i32>} : memref<3x8x128xf32, #tpu.memory_space<vmem>>, vector<1x8x128xf32>,
    return
  }
  func.func @transform_0(%arg0: i32) -> (i32, i32) {
    %c0_i32 = arith.constant 0 : i32
    %c0_i32_0 = arith.constant 0 : i32
    %c0_i32_1 = arith.constant 0 : i32
    return %c0_i32, %c0_i32_0 : i32, i32
  }
  func.func @transform_1(%arg0: i32) -> i32 {
    %c0_i32 = arith.constant 0 : i32
    %c0_i32_0 = arith.constant 0 : i32
    return %c0_i32 : i32
  }
  func.func @transform_2(%arg0: i32) -> (i32, i32) {
    %c0_i32 = arith.constant 0 : i32
    %c0_i32_0 = arith.constant 0 : i32
    %c0_i32_1 = arith.constant 0 : i32
    return %c0_i32, %c0_i32_0 : i32, i32
  }
  func.func @transform_3(%arg0: i32) -> i32 {
    %c0_i32 = arith.constant 0 : i32
    %c0_i32_0 = arith.constant 0 : i32
    return %c0_i32 : i32
  }
  func.func @transform_4(%arg0: i32) -> (i32, i32, i32) {
    %c0_i32 = arith.constant 0 : i32
    %c0_i32_0 = arith.constant 0 : i32
    %c0_i32_1 = arith.constant 0 : i32
    return %c0_i32, %c0_i32_0, %arg0 : i32, i32, i32
  }
  func.func @transform_5(%arg0: i32) -> (i32, i32, i32) {
    %c0_i32 = arith.constant 0 : i32
    %c0_i32_0 = arith.constant 0 : i32
    %c0_i32_1 = arith.constant 0 : i32
    return %c0_i32, %c0_i32_0, %arg0 : i32, i32, i32
  }
}

</mosaic_0001>

<bundles_post_ra>
// kernel: sample_module_forward.1
= control target key start
LH: loop header
LB: loop body
LE: loop exit
PB: predicated region body
PF: predicated region fallthrough
CT: control target
= control target key end

     0   :  { %10 = vsyncpa [#allocation3], 0  ;;  %s661_s0 = inlined_call_operand.vmem [shape: f32[6,4], index: 0, kind: input, shape index: {}]   ;;  %s662_s1 = inlined_call_operand.vmem [shape: f32[6], index: 1, kind: input, shape index: {}]   ;;  %s663_s2 = inlined_call_operand.vmem [shape: f32[3,6], index: 2, kind: input, shape index: {}]   ;;  %s664_s3 = inlined_call_operand.vmem [shape: f32[3], index: 3, kind: input, shape index: {}]   ;;  %s665_s4 = inlined_call_operand.vmem [shape: f32[4,8,128], index: 4, kind: input, shape index: {}]   ;;  %s666_s5 = inlined_call_operand.vmem [shape: f32[3,8,128], index: 5, kind: output, shape index: {}]  }
   0x1   :  { %11 = vsyncpa [#allocation5], 0  ;;  %s29_s20 = sshll.u32 %s662_s1, 4  ;;  %s30_s20 = int_to_ptr.vmem [resolvable:$true] %s29_s20 }
   0x2   :  { %12 = vsyncpa [#allocation8], 0  ;;  %s19_s23 = sshll.u32 %s661_s0, 4  ;;  %s361_s24 = scalar_lea.vmem %s30_s20, 16  ;;  %s20_s23 = int_to_ptr.vmem [resolvable:$true] %s19_s23 }
   0x3   :  { %p362_p0 = scmp.ne.s32.totalorder %s30_s20, %s361_s24  ;;  %p366_p1 = scmp.lt.s32.totalorder %s30_s20, %s30_s20 }
   0x4   :  { %p367_p2 = scmp.lt.s32.totalorder %s361_s24, %s361_s24 }
   0x6   :  { %p368_p3 = por %p367_p2, %p366_p1 }
   0x8   :  { %p369_p4 = pnand %p368_p3, %p362_p0 }
   0xa   :  { %372 = shalt.err (!%p369_p4)
}
   0xb   :  { %s415_s25 = smov [#allocation4]   ;;  %s373_s26 = scalar_lea.vmem %s20_s23, 128 }
   0xc   :  { %32 = dma.vmem_to_smem %s30_s20, 16, %s415_s25, [#allocation5]  }
   0xd   :  { %p374_p5 = scmp.ne.s32.totalorder %s20_s23, %s373_s26  ;;  %p378_p6 = scmp.lt.s32.totalorder %s20_s23, %s20_s23 }
   0xe   :  { %p379_p7 = scmp.lt.s32.totalorder %s373_s26, %s373_s26 }
  0x10   :  { %p380_p8 = por %p379_p7, %p378_p6 }
  0x12   :  { %p381_p9 = pnand %p380_p8, %p374_p5 }
  0x14   :  { %384 = shalt.err (!%p381_p9)
}
  0x15   :  { %s416_s1 = smov [#allocation2]   ;;  %s39_s28 = sshll.u32 %s663_s2, 4  ;;  %s40_s28 = int_to_ptr.vmem [resolvable:$true] %s39_s28 }
  0x16   :  { %22 = dma.vmem_to_smem %s20_s23, 128, %s416_s1, [#allocation3]  }
  0x17   :  { %s49_s6 = sshll.u32 %s664_s3, 4  ;;  %s385_s7 = scalar_lea.vmem %s40_s28, 64  ;;  %s50_s6 = int_to_ptr.vmem [resolvable:$true] %s49_s6 }
  0x18   :  { %p386_p10 = scmp.ne.s32.totalorder %s40_s28, %s385_s7  ;;  %p390_p11 = scmp.lt.s32.totalorder %s40_s28, %s40_s28 }
  0x19   :  { %p391_p12 = scmp.lt.s32.totalorder %s385_s7, %s385_s7 }
  0x1b   :  { %p392_p13 = por %p391_p12, %p390_p11 }
  0x1d   :  { %p393_p0 = pnand %p392_p13, %p386_p10 }
  0x1f   :  { %396 = shalt.err (!%p393_p0)
}
  0x20   :  { %s417_s8 = smov [#allocation6]   ;;  %s397_s9 = scalar_lea.vmem %s50_s6, 16 }
  0x21   :  { %42 = dma.vmem_to_smem %s40_s28, 64, %s417_s8, [#allocation5]  }
  0x22   :  { %p398_p1 = scmp.ne.s32.totalorder %s50_s6, %s397_s9  ;;  %p402_p2 = scmp.lt.s32.totalorder %s50_s6, %s50_s6 }
  0x23   :  { %p403_p3 = scmp.lt.s32.totalorder %s397_s9, %s397_s9 }
  0x25   :  { %p404_p4 = por %p403_p3, %p402_p2 }
  0x27   :  { %p405_p5 = pnand %p404_p4, %p398_p1 }
  0x29   :  { %408 = shalt.err (!%p405_p5)
}
  0x2a   :  { %s418_s2 = smov [#allocation7]  }
  0x2b   :  { %52 = dma.vmem_to_smem %s50_s6, 16, %s418_s2, [#allocation8]  }
  0x2c   :  { %409 = dma.done.wait [#allocation3], 128  }
  0x2d   :  { %410 = vsyncadd [#allocation3], 4294967168 }
  0x2e   :  { %411 = dma.done.wait [#allocation5], 80  }
  0x2f   :  { %412 = vsyncadd [#allocation5], 4294967216 }
  0x30   :  { %413 = dma.done.wait [#allocation8], 16  }
  0x31   :  { %414 = vsyncadd [#allocation8], 4294967280 }
  0x32   :  { %67 = sfence }
  0x33   :  { %s75_s3 = sld [smem:[#allocation2]]  ;;  %s300_s10 = sld [smem:[#allocation2 + $0x1]]  ;;  %v466_v0 = vld [vmem:[%s665_s4] sm:$0xff]  ;;  %v475_v1 = vld [vmem:[%s665_s4 + $0x8] sm:$0xff]  ;;  %v480_v2 = vld [vmem:[%s665_s4 + $0x10] sm:$0xff] }
  0x34   :  { %s301_s11 = sld [smem:[#allocation2 + $0x2]]  ;;  %s302_s12 = sld [smem:[#allocation2 + $0x3]]  ;;  %v489_v3 = vld [vmem:[%s665_s4 + $0x18] sm:$0xff] }
  0x35   :  { %s461_s13 = sld [smem:[#allocation4]]  ;;  %s304_s15 = sld [smem:[#allocation2 + $0x81]] }
  0x36   :  { %s303_s14 = sld [smem:[#allocation2 + $0x80]]  ;;  %s468_s18 = sld [smem:[#allocation2 + $0x82]] }
  0x37   :  { %s470_s19 = sld [smem:[#allocation2 + $0x83]]  ;;  %s482_s24 = sld [smem:[#allocation4 + $0x1]] }
  0x38   :  { %s484_s25 = sld [smem:[#allocation2 + $0x100]]  ;;  %s491_s0 = sld [smem:[#allocation2 + $0x101]] }
  0x39   :  { %v76_v4 = vstv %s75_s3  ;;  %s493_s27 = sld [smem:[#allocation2 + $0x102]]  ;;  %v79_v6 = vstv %s300_s10  ;;  %s496_s28 = sld [smem:[#allocation2 + $0x103]] }
  0x3a   :  { %v77_v5 = vmul.f32 %v76_v4, %v466_v0  ;;  %v83_v7 = vstv %s301_s11  ;;  %s498_s29 = sld [smem:[#allocation4 + $0x2]]  ;;  %v80_v8 = vmul.f32 %v475_v1, %v79_v6  ;;  %v87_v10 = vstv %s302_s12  ;;  %s502_s4 = sld [smem:[#allocation2 + $0x180]] }
  0x3b   :  { %v84_v9 = vmul.f32 %v480_v2, %v83_v7  ;;  %s504_s30 = sld [smem:[#allocation2 + $0x181]]  ;;  %v88_v11 = vmul.f32 %v489_v3, %v87_v10  ;;  %v98_v13 = vstv %s304_s15  ;;  %s507_s6 = sld [smem:[#allocation2 + $0x182]]  ;;  %v91_v18 = vstv %s461_s13 }
  0x3c   :  { %v95_v12 = vstv %s303_s14  ;;  %s509_s7 = sld [smem:[#allocation2 + $0x183]]  ;;  %v81_v14 = vadd.f32 %v80_v8, %v77_v5  ;;  %v99_v16 = vmul.f32 %v475_v1, %v98_v13  ;;  %v102_v17 = vstv %s468_s18  ;;  %s516_s9 = sld [smem:[#allocation2 + $0x200]] }
  0x3d   :  { %v96_v15 = vmul.f32 %v95_v12, %v466_v0  ;;  %s514_s8 = sld [smem:[#allocation4 + $0x3]]  ;;  %v103_v19 = vmul.f32 %v480_v2, %v102_v17  ;;  %v106_v20 = vstv %s470_s19  ;;  %s522_s2 = sld [smem:[#allocation2 + $0x201]]  ;;  %v110_v26 = vstv %s482_s24 }
  0x3e   :  { %v114_v21 = vstv %s484_s25  ;;  %s524_s3 = sld [smem:[#allocation2 + $0x202]]  ;;  %v85_v22 = vadd.f32 %v84_v9, %v81_v14  ;;  %v107_v24 = vmul.f32 %v489_v3, %v106_v20  ;;  %v117_v27 = vstv %s491_s0  ;;  %s532_s10 = sld [smem:[#allocation2 + $0x203]] }
  0x3f   :  { %v100_v23 = vadd.f32 %v99_v16, %v96_v15  ;;  %v115_v25 = vmul.f32 %v114_v21, %v466_v0  ;;  %v121_v28 = vstv %s493_s27  ;;  %v125_v29 = vstv %s496_s28  ;;  %s536_s11 = sld [smem:[#allocation2 + $0x280]]  ;;  %s542_s12 = sld [smem:[#allocation2 + $0x281]] }
  0x40   :  { %v89_v30 = vadd.f32 %v88_v11, %v85_v22  ;;  %v118_v32 = vmul.f32 %v475_v1, %v117_v27  ;;  %v122_v33 = vmul.f32 %v480_v2, %v121_v28  ;;  %v126_v34 = vmul.f32 %v489_v3, %v125_v29  ;;  %s544_s13 = sld [smem:[#allocation2 + $0x282]]  ;;  %s547_s14 = sld [smem:[#allocation4 + $0x4]] }
  0x41   :  { %v104_v31 = vadd.f32 %v103_v19, %v100_v23  ;;  %v133_v35 = vstv %s502_s4  ;;  %v136_v36 = vstv %s504_s30  ;;  %v140_v37 = vstv %s507_s6  ;;  %s553_s15 = sld [smem:[#allocation2 + $0x283]]  ;;  %s555_s16 = sld [smem:[#allocation6]] }
  0x42   :  { %v92_v38 = vadd.f32 %v91_v18, %v89_v30  ;;  %v119_v40 = vadd.f32 %v118_v32, %v115_v25  ;;  %v134_v41 = vmul.f32 %v133_v35, %v466_v0  ;;  %v129_v42 = vstv %s498_s29  ;;  %s559_s17 = sld [smem:[#allocation6 + $0x1]]  ;;  %s564_s18 = sld [smem:[#allocation6 + $0x2]] }
  0x43   :  { %v108_v39 = vadd.f32 %v107_v24, %v104_v31  ;;  %v137_v43 = vmul.f32 %v475_v1, %v136_v36  ;;  %v141_v44 = vmul.f32 %v480_v2, %v140_v37  ;;  %v144_v45 = vstv %s509_s7  ;;  %s566_s19 = sld [smem:[#allocation6 + $0x3]]  ;;  %s576_s20 = sld [smem:[#allocation4 + $0x5]] }
  0x44   :  { %v123_v47 = vadd.f32 %v122_v33, %v119_v40  ;;  %v145_v48 = vmul.f32 %v489_v3, %v144_v45  ;;  %v148_v49 = vstv %s514_s8  ;;  %v152_v51 = vstv %s516_s9  ;;  %s578_s21 = sld [smem:[#allocation6 + $0x4]]  ;;  %s582_s22 = sld [smem:[#allocation6 + $0x80]] }
  0x45   :  { %v111_v46 = vadd.f32 %v110_v26, %v108_v39  ;;  %v138_v50 = vadd.f32 %v137_v43, %v134_v41  ;;  %v155_v52 = vstv %s522_s2  ;;  %v159_v53 = vstv %s524_s3  ;;  %s584_s23 = sld [smem:[#allocation6 + $0x81]]  ;;  %s589_s24 = sld [smem:[#allocation6 + $0x82]] }
  0x46   :  { %v568_v54 = vmax.f32 %v92_v38, 0.0  ;;  %v127_v55 = vadd.f32 %v126_v34, %v123_v47  ;;  %v153_v56 = vmul.f32 %v152_v51, %v466_v0  ;;  %v156_v57 = vmul.f32 %v475_v1, %v155_v52  ;;  %s591_s25 = sld [smem:[#allocation6 + $0x83]]  ;;  %s600_s26 = sld [smem:[#allocation6 + $0x5]] }
  0x47   :  { %v572_v58 = vmax.f32 %v111_v46, 0.0  ;;  %v142_v59 = vadd.f32 %v141_v44, %v138_v50  ;;  %v160_v60 = vmul.f32 %v480_v2, %v159_v53  ;;  %v163_v61 = vstv %s532_s10  ;;  %s602_s1 = sld [smem:[#allocation6 + $0x84]]  ;;  %s606_s0 = sld [smem:[#allocation6 + $0x85]] }
  0x48   :  { %v130_v62 = vadd.f32 %v129_v42, %v127_v55  ;;  %v157_v63 = vadd.f32 %v156_v57, %v153_v56  ;;  %v164_v4 = vmul.f32 %v489_v3, %v163_v61  ;;  %v171_v5 = vstv %s536_s11  ;;  %s608_s27 = sld [smem:[#allocation6 + $0x100]]  ;;  %s613_s28 = sld [smem:[#allocation6 + $0x101]] }
  0x49   :  { %v146_v6 = vadd.f32 %v145_v48, %v142_v59  ;;  %v172_v7 = vmul.f32 %v171_v5, %v466_v0  ;;  %v174_v8 = vstv %s542_s12  ;;  %v178_v9 = vstv %s544_s13  ;;  %s615_s29 = sld [smem:[#allocation6 + $0x102]]  ;;  %s621_s4 = sld [smem:[#allocation6 + $0x103]] }
  0x4a   :  { %v593_v10 = vmax.f32 %v130_v62, 0.0  ;;  %v161_v11 = vadd.f32 %v160_v60, %v157_v63  ;;  %v175_v12 = vmul.f32 %v475_v1, %v174_v8  ;;  %v179_v13 = vmul.f32 %v480_v2, %v178_v9  ;;  %s624_s30 = sld [smem:[#allocation6 + $0x104]]  ;;  %s630_s6 = sld [smem:[#allocation7]] }
  0x4b   :  { %v149_v14 = vadd.f32 %v148_v49, %v146_v6  ;;  %v167_v15 = vstv %s547_s14  ;;  %v182_v16 = vstv %s553_s15  ;;  %v190_v0 = vstv %s555_s16  ;;  %s633_s7 = sld [smem:[#allocation6 + $0x105]]  ;;  %s638_s8 = sld [smem:[#allocation7 + $0x1]] }
  0x4c   :  { %v165_v17 = vadd.f32 %v164_v4, %v161_v11  ;;  %v176_v18 = vadd.f32 %v175_v12, %v172_v7  ;;  %v183_v19 = vmul.f32 %v489_v3, %v182_v16  ;;  %v191_v1 = vmul.f32 %v190_v0, %v568_v54  ;;  %s346_s9 = sld [smem:[#allocation7 + $0x2]] }
  0x4d   :  { %v150_v2 = vmax.f32 %v149_v14, 0.0  ;;  %v193_v20 = vstv %s559_s17  ;;  %v197_v21 = vstv %s564_s18  ;;  %v201_v22 = vstv %s566_s19 }
  0x4e   :  { %v168_v23 = vadd.f32 %v167_v15, %v165_v17  ;;  %v180_v3 = vadd.f32 %v179_v13, %v176_v18  ;;  %v194_v24 = vmul.f32 %v193_v20, %v572_v58  ;;  %v198_v25 = vmul.f32 %v197_v21, %v593_v10 }
  0x4f   :  { %v186_v26 = vstv %s576_s20  ;;  %v202_v27 = vmul.f32 %v201_v22, %v150_v2  ;;  %v205_v28 = vstv %s578_s21  ;;  %v216_v32 = vstv %s582_s22 }
  0x50   :  { %v169_v29 = vmax.f32 %v168_v23, 0.0  ;;  %v184_v30 = vadd.f32 %v183_v19, %v180_v3  ;;  %v195_v31 = vadd.f32 %v194_v24, %v191_v1  ;;  %v217_v33 = vmul.f32 %v216_v32, %v568_v54 }
  0x51   :  { %v219_v34 = vstv %s584_s23  ;;  %v223_v35 = vstv %s589_s24  ;;  %v227_v36 = vstv %s591_s25  ;;  %v209_v41 = vstv %s600_s26 }
  0x52   :  { %v187_v37 = vadd.f32 %v186_v26, %v184_v30  ;;  %v199_v38 = vadd.f32 %v198_v25, %v195_v31  ;;  %v206_v39 = vmul.f32 %v205_v28, %v169_v29  ;;  %v220_v40 = vmul.f32 %v219_v34, %v572_v58 }
  0x53   :  { %v224_v42 = vmul.f32 %v223_v35, %v593_v10  ;;  %v231_v43 = vstv %s602_s1  ;;  %v228_v47 = vmul.f32 %v227_v36, %v150_v2  ;;  %v235_v48 = vstv %s606_s0 }
  0x54   :  { %v188_v44 = vmax.f32 %v187_v37, 0.0  ;;  %v203_v45 = vadd.f32 %v202_v27, %v199_v38  ;;  %v221_v46 = vadd.f32 %v220_v40, %v217_v33  ;;  %v242_v49 = vstv %s608_s27 }
  0x55   :  { %v245_v50 = vstv %s613_s28  ;;  %v249_v51 = vstv %s615_s29  ;;  %v232_v56 = vmul.f32 %v231_v43, %v169_v29  ;;  %v243_v57 = vmul.f32 %v242_v49, %v568_v54 }
  0x56   :  { %v207_v52 = vadd.f32 %v206_v39, %v203_v45  ;;  %v210_v53 = vmul.f32 %v209_v41, %v188_v44  ;;  %v225_v55 = vadd.f32 %v224_v42, %v221_v46  ;;  %v246_v59 = vmul.f32 %v245_v50, %v572_v58 }
  0x57   :  { %v250_v60 = vmul.f32 %v249_v51, %v593_v10  ;;  %v253_v61 = vstv %s621_s4  ;;  %v236_v63 = vmul.f32 %v235_v48, %v188_v44  ;;  %v257_v4 = vstv %s624_s30 }
  0x58   :  { %v229_v62 = vadd.f32 %v228_v47, %v225_v55  ;;  %v211_v5 = vadd.f32 %v210_v53, %v207_v52  ;;  %v247_v6 = vadd.f32 %v246_v59, %v243_v57  ;;  %v254_v7 = vmul.f32 %v253_v61, %v150_v2 }
  0x59   :  { %v213_v8 = vstv %s630_s6  ;;  %v261_v11 = vstv %s633_s7  ;;  %v239_v12 = vstv %s638_s8  ;;  %v258_v14 = vmul.f32 %v257_v4, %v169_v29 }
  0x5a   :  { %v233_v9 = vadd.f32 %v232_v56, %v229_v62  ;;  %v251_v13 = vadd.f32 %v250_v60, %v247_v6  ;;  %v214_v54 = vadd.f32 %v213_v8, %v211_v5  ;;  %v262_v58 = vmul.f32 %v261_v11, %v188_v44 }
  0x5b   :  { %v265_v17 = vstv %s346_s9 }
  0x5c   :  { %v237_v15 = vadd.f32 %v236_v63, %v233_v9  ;;  %v255_v16 = vadd.f32 %v254_v7, %v251_v13 }
  0x5e   :  { %v240_v0 = vadd.f32 %v239_v12, %v237_v15  ;;  %v259_v10 = vadd.f32 %v258_v14, %v255_v16 }
  0x60   :  { %v263_v18 = vadd.f32 %v262_v58, %v259_v10  ;;  %v267_v19 = vmax.f32 %v214_v54, %v240_v0 }
  0x62   :  { %v266_v1 = vadd.f32 %v265_v17, %v263_v18 }
  0x64   :  { %v268_v20 = vmax.f32 %v267_v19, %v266_v1 }
  0x66   :  { %v269_v21 = vsub.f32 %v214_v54, %v268_v20  ;;  %v272_v22 = vsub.f32 %v240_v0, %v268_v20  ;;  %v275_v2 = vsub.f32 %v266_v1, %v268_v20 }
  0x68   :  { %v270_v23 = vmul.f32 1.442695, %v269_v21  ;;  %v273_v3 = vmul.f32 1.442695, %v272_v22  ;;  %v276_v24 = vmul.f32 1.442695, %v275_v2 }
  0x6a   :  { %353 = vpow2.f32 %v270_v23 }
  0x6b   :  { %355 = vpow2.f32 %v273_v3 }
  0x6c   :  { %357 = vpow2.f32 %v276_v24 }
  0x74   :  { %v354_v25 = vpop.eup %353 }
  0x75   :  { %v356_v26 = vpop.eup %355 }
  0x76   :  { %v358_v27 = vpop.eup %357  ;;  %v278_v28 = vadd.f32 %v356_v26, %v354_v25 }
  0x78   :  { %v279_v29 = vadd.f32 %v358_v27, %v278_v28 }
  0x7a   :  { %359 = vrcp.f32 %v279_v29 }
  0x84   :  { %v360_v30 = vpop.eup %359 }
  0x85   :  { %v282_v31 = vmul.f32 %v360_v30, %v354_v25  ;;  %v284_v32 = vmul.f32 %v360_v30, %v356_v26  ;;  %v287_v33 = vmul.f32 %v360_v30, %v358_v27 }
  0x87   :  { %283 = vst [vmem:[%s666_s5] sm:$0xff] %v282_v31  ;;  %347 = vst [vmem:[%s666_s5 + $0x8] sm:$0xff] %v284_v32 }
  0x88   :  { %348 = vst [vmem:[%s666_s5 + $0x10] sm:$0xff] %v287_v33 }
  0x89   :  { %294 = vsyncpa [#allocation3], 1 }
  0x8a   :  { %295 = vsyncpa [#allocation5], 1 }
  0x8b   :  { %296 = vsyncpa [#allocation8], 1 }

</bundles_post_ra>
